<compile_context>
chip_gen: v6e
topology: v6e:2x2x1
jax: 0.10.0
libtpu: 0.0.40
codegen_flags: <defaults>
</compile_context>

<pallas_src>
import functools

import jax
import jax.numpy as jnp
import numpy as np
from jax.experimental import pallas as pl
from jax.experimental.pallas import tpu as pltpu

EPS = 1e-5  # torch.nn.InstanceNorm2d default


# --------------------------------------------------------------------------
# Fused Pallas kernel (one sample per grid step, everything VMEM-resident)
# --------------------------------------------------------------------------

def _instance_norm(y, gamma, beta, inv_l):
    """One-pass InstanceNorm. y: (C, L) f32; stats over the lane axis."""
    s1 = jnp.sum(y, axis=1, keepdims=True)
    s2 = jnp.sum(y * y, axis=1, keepdims=True)
    mean = s1 * inv_l
    var = jnp.maximum(s2 * inv_l - mean * mean, 0.0)
    return (y - mean) * jax.lax.rsqrt(var + EPS) * gamma + beta


def _make_res_block_kernel(H1, W1, kernel_size, dilation, pad, down):
    kh, kw = kernel_size
    dil_h, dil_w = dilation
    L = H1 * W1
    inv_l = 1.0 / L
    dhs = [a * dil_h - pad for a in range(kh)]          # row offsets per tap row
    dws = [b * dil_w - pad for b in range(kw)]          # col offsets per tap col
    pad_top = max(0, -min(dhs))
    pad_bot = max(0, max(dhs))

    def kernel(*refs):
        if down:
            (x_ref, w1_ref, w2_ref, w3_ref, w4_ref,
             g1, b1, g2, b2, g3, b3, g4, b4, o_ref) = refs
        else:
            (x_ref, w1_ref, w2_ref, w3_ref,
             g1, b1, g2, b2, g3, b3, o_ref) = refs

        x = x_ref[...]                                   # (Cin, L), input dtype
        x_bf = x.astype(jnp.bfloat16)

        # conv1 (1x1; stride folded in wrapper) + IN + ReLU.  Pre-IN conv
        # biases cancel under the mean subtraction and are dropped here.
        y1 = jnp.dot(w1_ref[...], x_bf, preferred_element_type=jnp.float32)
        y1 = jnp.maximum(_instance_norm(y1, g1[...], b1[...], inv_l), 0.0)
        oc1 = y1.shape[0]

        # ---- conv2 (kh x kw dilated, stride 1) --------------------------------
        # Column index of every lane, generated in-kernel (no HBM mask array).
        lane = jax.lax.broadcasted_iota(jnp.int32, (1, L), 1)
        if W1 & (W1 - 1) == 0:
            col = jnp.bitwise_and(lane, W1 - 1)
        else:
            col = jax.lax.rem(lane, W1)

        # Column shifts: only the dw != 0 taps need a lane roll (2 rolls total),
        # each masked exactly once at the row boundary.
        col_vars = []
        for dw in dws:
            if dw == 0:
                v = y1
            else:
                rolled = pltpu.roll(y1, (-dw) % L, axis=1)
                mask = (col < W1 - dw) if dw > 0 else (col >= -dw)
                v = rolled * mask.astype(jnp.float32)
            col_vars.append(v)

        # Row shifts: zero-padded lane slices (aligned / ~free when W1 % 128 == 0);
        # the zero padding replaces the row-boundary masks.
        if pad_top or pad_bot:
            padded = []
            for v in col_vars:
                pieces = []
                if pad_top:
                    pieces.append(jnp.zeros((oc1, pad_top * W1), jnp.float32))
                pieces.append(v)
                if pad_bot:
                    pieces.append(jnp.zeros((oc1, pad_bot * W1), jnp.float32))
                padded.append(jnp.concatenate(pieces, axis=1))
        else:
            padded = col_vars

        # Stack all kh*kw tap operands along sublanes and let the MXU accumulate
        # them in a single deep (oc2, kh*kw*oc1) @ (kh*kw*oc1, L) matmul.
        parts = []
        for dh in dhs:
            start = (pad_top + dh) * W1
            for v in padded:
                parts.append(v[:, start:start + L] if v.shape[1] != L else v)
        stacked = parts[0] if len(parts) == 1 else jnp.concatenate(parts, axis=0)

        y2 = jnp.dot(w2_ref[...], stacked.astype(jnp.bfloat16),
                     preferred_element_type=jnp.float32)
        y2 = jnp.maximum(_instance_norm(y2, g2[...], b2[...], inv_l), 0.0)

        # conv3 (1x1) + IN.
        y3 = jnp.dot(w3_ref[...], y2.astype(jnp.bfloat16),
                     preferred_element_type=jnp.float32)
        y3 = _instance_norm(y3, g3[...], b3[...], inv_l)

        # shortcut branch (conv4 + IN when downsampling, else identity).
        if down:
            sc = jnp.dot(w4_ref[...], x_bf, preferred_element_type=jnp.float32)
            sc = _instance_norm(sc, g4[...], b4[...], inv_l)
        else:
            sc = x.astype(jnp.float32)

        o_ref[...] = jnp.maximum(y3 + sc, 0.0).astype(o_ref.dtype)

    return kernel


def _full_spec(shape):
    nd = len(shape)
    return pl.BlockSpec(shape, lambda *_: (0,) * nd)


def res_block_forward(x_nchw, params, *, kernel_size=(3, 3), dilation=(1, 1),
                      stride=(2, 2), down=False):
    """NCHW in, NCHW out.  One fused Pallas kernel; grid iterates over batch."""
    assert stride[0] <= 2, "stride must be <= 2"
    down = down or stride[0] > 1
    N, Cin, H, W = x_nchw.shape
    sh, sw = stride
    kh, kw = kernel_size
    pad = (kh + (kh - 1) * (dilation[0] - 1)) // 2

    oc1 = params["w1t"].shape[0]
    oc2 = params["w2t"].shape[1]
    oc3 = params["w3t"].shape[0]
    if not down:
        assert Cin == oc3, "identity shortcut requires in_channel == out_channels[2]"

    if sh == 1 and sw == 1:
        xs = x_nchw                        # reshape below is metadata-only
    else:
        # TODO(synk): fold the stride-2 subsample into the input BlockSpec
        # (free (N,C,H//sh,sh,W//sw,sw) reshape + size-1 blocks on the stride
        # axes) so the kernel DMA does the subsampling instead of this
        # quarter-size XLA pre-pass.
        xs = x_nchw[:, :, ::sh, ::sw]
    H1, W1 = xs.shape[2], xs.shape[3]
    L = H1 * W1
    xs_flat = xs.reshape(N, Cin, L)        # keep input dtype; cast in-kernel

    # bf16 matmul operands (f32 accumulation in-kernel); IN params stay f32.
    w1 = params["w1t"].astype(jnp.bfloat16)
    w2 = jnp.transpose(params["w2t"], (1, 0, 2)).reshape(
        oc2, kh * kw * oc1).astype(jnp.bfloat16)
    w3 = params["w3t"].astype(jnp.bfloat16)

    kernel = _make_res_block_kernel(H1, W1, kernel_size, dilation, pad, down)

    args = [xs_flat, w1, w2, w3]
    in_specs = [
        pl.BlockSpec((None, Cin, L), lambda n: (n, 0, 0)),
        _full_spec(w1.shape), _full_spec(w2.shape), _full_spec(w3.shape),
    ]
    if down:
        w4 = params["w4t"].astype(jnp.bfloat16)
        args.append(w4)
        in_specs.append(_full_spec(w4.shape))
    pnames = ["g1", "bt1", "g2", "bt2", "g3", "bt3"] + (["g4", "bt4"] if down else [])
    for name in pnames:
        args.append(params[name])
        in_specs.append(_full_spec(params[name].shape))

    # Whole sample resident in VMEM per grid step; give the compiler an explicit
    # scoped-VMEM budget (v5e default is only 16 MiB).
    # TODO(synk): for realistic FingerNet images (e.g. 512x512) on v7x's 64 MiB
    # VMEM, add a spatial grid axis (L tiled in multiples of 128 with a dil*W1
    # halo for conv2) and two-pass (sum / sum-sq) InstanceNorm across tiles.
    blk_bytes = 4 * L * (Cin + oc1 * (kh * kw + 3) + 2 * oc2 + 3 * oc3)
    vmem_limit = int(min(100 * 2**20, max(32 * 2**20, 4 * blk_bytes)))

    out = pl.pallas_call(
        kernel,
        out_shape=jax.ShapeDtypeStruct((N, oc3, L), jnp.float32),
        grid=(N,),
        in_specs=in_specs,
        out_specs=pl.BlockSpec((None, oc3, L), lambda n: (n, 0, 0)),
        compiler_params=pltpu.CompilerParams(
            dimension_semantics=("parallel",),
            vmem_limit_bytes=vmem_limit),
    )(*args)
    return out.reshape(N, oc3, H1, W1)


# --------------------------------------------------------------------------
# Parameter creation (weights stored pre-transposed for the (Cout,Cin)@(Cin,HW)
# kernel layout; biases kept only for the reference -- IN cancels them)
# --------------------------------------------------------------------------

def init_params(key, in_channel, out_channels, kernel_size, down):
    oc1, oc2, oc3 = out_channels
    kh, kw = kernel_size
    ks = jax.random.split(key, 16)

    def w(k, shape):
        return 0.1 * jax.random.normal(k, shape, jnp.float32)

    def col(k, c, base=0.0):
        return base + 0.05 * jax.random.normal(k, (c, 1), jnp.float32)

    p = {
        "w1t": w(ks[0], (oc1, in_channel)), "b1": col(ks[1], oc1),
        "g1": col(ks[2], oc1, 1.0), "bt1": col(ks[3], oc1),
        "w2t": w(ks[4], (kh * kw, oc2, oc1)), "b2": col(ks[5], oc2),
        "g2": col(ks[6], oc2, 1.0), "bt2": col(ks[7], oc2),
        "w3t": w(ks[8], (oc3, oc2)), "b3": col(ks[9], oc3),
        "g3": col(ks[10], oc3, 1.0), "bt3": col(ks[11], oc3),
    }
    if down:
        p.update({
            "w4t": w(ks[12], (oc3, in_channel)), "b4": col(ks[13], oc3),
            "g4": col(ks[14], oc3, 1.0), "bt4": col(ks[15], oc3),
        })
    return p


# --------------------------------------------------------------------------
# Pure-JAX reference (NCHW, biases included, f32) for correctness checking
# --------------------------------------------------------------------------

def res_block_reference(x_nchw, params, *, kernel_size, dilation, stride, down):
    down = down or stride[0] > 1
    x = x_nchw.astype(jnp.float32)

    def inorm(y, g, bt):
        m = jnp.mean(y, axis=(2, 3), keepdims=True)
        v = jnp.mean((y - m) ** 2, axis=(2, 3), keepdims=True)
        return ((y - m) * jax.lax.rsqrt(v + EPS) * g.reshape(1, -1, 1, 1)
                + bt.reshape(1, -1, 1, 1))

    def conv1x1(y, wt, b, s=(1, 1)):
        ys = y[:, :, ::s[0], ::s[1]]
        return jnp.einsum("nchw,oc->nohw", ys, wt) + b.reshape(1, -1, 1, 1)

    y = jnp.maximum(inorm(conv1x1(x, params["w1t"], params["b1"], stride),
                          params["g1"], params["bt1"]), 0.0)

    kh, kw = kernel_size
    p = (kh + (kh - 1) * (dilation[0] - 1)) // 2
    oc2, oc1 = params["w2t"].shape[1], params["w2t"].shape[2]
    w2 = jnp.transpose(params["w2t"].reshape(kh, kw, oc2, oc1), (2, 3, 0, 1))
    y2 = jax.lax.conv_general_dilated(
        y, w2, window_strides=(1, 1), padding=[(p, p), (p, p)],
        rhs_dilation=dilation, dimension_numbers=("NCHW", "OIHW", "NCHW"))
    y2 = y2 + params["b2"].reshape(1, -1, 1, 1)
    y2 = jnp.maximum(inorm(y2, params["g2"], params["bt2"]), 0.0)

    y3 = inorm(conv1x1(y2, params["w3t"], params["b3"]),
               params["g3"], params["bt3"])

    if down:
        sc = inorm(conv1x1(x, params["w4t"], params["b4"], stride),
                   params["g4"], params["bt4"])
    else:
        sc = x
    return jnp.maximum(y3 + sc, 0.0)


# --------------------------------------------------------------------------
# main
# --------------------------------------------------------------------------

if __name__ == "__main__":
    def run_case(in_channel, out_channels, kernel_size, dilation, stride,
                 down_flag, H=16, W=16, N=2, seed=0):
        down = down_flag or stride[0] > 1
        key = jax.random.PRNGKey(seed)
        kx, kp = jax.random.split(key)
        x = jax.random.normal(kx, (N, in_channel, H, W), jnp.float32)  # NCHW
        params = init_params(kp, in_channel, out_channels, kernel_size, down)
        fwd = jax.jit(functools.partial(
            res_block_forward, kernel_size=kernel_size, dilation=dilation,
            stride=stride, down=down_flag))
        out = jax.block_until_ready(fwd(x, params))
        ref = res_block_reference(x, params, kernel_size=kernel_size,
                                  dilation=dilation, stride=stride, down=down_flag)
        # bf16 matmul operands (f32 accumulation) -> compare at bf16 tolerance.
        np.testing.assert_allclose(np.asarray(out), np.asarray(ref),
                                   rtol=2e-2, atol=2e-2)
        return out

    # FingerNet default config: stride 2 => conv4/InsN4 downsampling shortcut.
    out = run_case(4, [8, 8, 16], (3, 3), (1, 1), (2, 2), False)
    assert out.shape == (2, 16, 8, 8)

    # Identity-shortcut branch: stride 1, Cin == oc3, dilated 3x3 conv.
    out2 = run_case(16, [8, 8, 16], (3, 3), (2, 2), (1, 1), False)
    assert out2.shape == (2, 16, 16, 16)

    print("KERNEL_OK")
</pallas_src>

<mosaic_0001>
module attributes {stable_mosaic.version = 11 : i64} {
  func.func @kernel(%arg0: i32, %arg1: memref<1x4x64xf32, #tpu.memory_space<vmem>>, %arg2: memref<8x4xbf16, #tpu.memory_space<vmem>>, %arg3: memref<8x72xbf16, #tpu.memory_space<vmem>>, %arg4: memref<16x8xbf16, #tpu.memory_space<vmem>>, %arg5: memref<16x4xbf16, #tpu.memory_space<vmem>>, %arg6: memref<8x1xf32, #tpu.memory_space<vmem>>, %arg7: memref<8x1xf32, #tpu.memory_space<vmem>>, %arg8: memref<8x1xf32, #tpu.memory_space<vmem>>, %arg9: memref<8x1xf32, #tpu.memory_space<vmem>>, %arg10: memref<16x1xf32, #tpu.memory_space<vmem>>, %arg11: memref<16x1xf32, #tpu.memory_space<vmem>>, %arg12: memref<16x1xf32, #tpu.memory_space<vmem>>, %arg13: memref<16x1xf32, #tpu.memory_space<vmem>>, %arg14: memref<1x16x64xf32, #tpu.memory_space<vmem>>) attributes {dimension_semantics = [#tpu.dimension_semantics<parallel>], iteration_bounds = array<i64: 2>, scalar_prefetch = 0 : i64, scratch_operands = 0 : i64, tpu.core_type = #tpu.core_type<tc>, window_params = [{transform_indices = @transform_0, window_bounds = array<i64: 1, 4, 64>}, {pipeline_mode = #tpu.pipeline_mode<synchronous>, transform_indices = @transform_1, window_bounds = array<i64: 8, 4>}, {pipeline_mode = #tpu.pipeline_mode<synchronous>, transform_indices = @transform_2, window_bounds = array<i64: 8, 72>}, {pipeline_mode = #tpu.pipeline_mode<synchronous>, transform_indices = @transform_3, window_bounds = array<i64: 16, 8>}, {pipeline_mode = #tpu.pipeline_mode<synchronous>, transform_indices = @transform_4, window_bounds = array<i64: 16, 4>}, {pipeline_mode = #tpu.pipeline_mode<synchronous>, transform_indices = @transform_5, window_bounds = array<i64: 8, 1>}, {pipeline_mode = #tpu.pipeline_mode<synchronous>, transform_indices = @transform_6, window_bounds = array<i64: 8, 1>}, {pipeline_mode = #tpu.pipeline_mode<synchronous>, transform_indices = @transform_7, window_bounds = array<i64: 8, 1>}, {pipeline_mode = #tpu.pipeline_mode<synchronous>, transform_indices = @transform_8, window_bounds = array<i64: 8, 1>}, {pipeline_mode = #tpu.pipeline_mode<synchronous>, transform_indices = @transform_9, window_bounds = array<i64: 16, 1>}, {pipeline_mode = #tpu.pipeline_mode<synchronous>, transform_indices = @transform_10, window_bounds = array<i64: 16, 1>}, {pipeline_mode = #tpu.pipeline_mode<synchronous>, transform_indices = @transform_11, window_bounds = array<i64: 16, 1>}, {pipeline_mode = #tpu.pipeline_mode<synchronous>, transform_indices = @transform_12, window_bounds = array<i64: 16, 1>}, {transform_indices = @transform_13, window_bounds = array<i64: 1, 16, 64>}]} {
    %c0 = arith.constant 0 : index
    %c0_0 = arith.constant 0 : index
    %c0_1 = arith.constant 0 : index
    %0 = vector.load %arg1[%c0, %c0_0, %c0_1] : memref<1x4x64xf32, #tpu.memory_space<vmem>>, vector<1x4x64xf32>
    %1 = vector.shape_cast %0 : vector<1x4x64xf32> to vector<4x64xf32>
    %2 = arith.truncf %1 : vector<4x64xf32> to vector<4x64xbf16>
    %c0_2 = arith.constant 0 : index
    %c0_3 = arith.constant 0 : index
    %3 = vector.load %arg2[%c0_2, %c0_3] : memref<8x4xbf16, #tpu.memory_space<vmem>>, vector<8x4xbf16>
    %cst = arith.constant dense<0.000000e+00> : vector<8x64xf32>
    %4 = tpu.matmul %3, %2, %cst {dimension_numbers = #tpu.dot_dimension_numbers<[1], [0], [0], [1], [0, 0, 1, 1], [], []>} : vector<8x4xbf16>, vector<4x64xbf16>, vector<8x64xf32> -> vector<8x64xf32>
    %c0_4 = arith.constant 0 : index
    %c0_5 = arith.constant 0 : index
    %5 = vector.load %arg6[%c0_4, %c0_5] : memref<8x1xf32, #tpu.memory_space<vmem>>, vector<8x1xf32>
    %c0_6 = arith.constant 0 : index
    %c0_7 = arith.constant 0 : index
    %6 = vector.load %arg7[%c0_6, %c0_7] : memref<8x1xf32, #tpu.memory_space<vmem>>, vector<8x1xf32>
    %cst_8 = arith.constant dense<0.000000e+00> : vector<8xf32>
    %7 = vector.multi_reduction <add>, %4, %cst_8 [1] : vector<8x64xf32> to vector<8xf32>
    %8 = vector.shape_cast %7 : vector<8xf32> to vector<8x1xf32>
    %9 = arith.mulf %4, %4 : vector<8x64xf32>
    %cst_9 = arith.constant dense<0.000000e+00> : vector<8xf32>
    %10 = vector.multi_reduction <add>, %9, %cst_9 [1] : vector<8x64xf32> to vector<8xf32>
    %11 = vector.shape_cast %10 : vector<8xf32> to vector<8x1xf32>
    %cst_10 = arith.constant 1.562500e-02 : f32
    %12 = vector.broadcast %cst_10 : f32 to vector<8x1xf32>
    %13 = arith.mulf %8, %12 : vector<8x1xf32>
    %cst_11 = arith.constant 1.562500e-02 : f32
    %14 = vector.broadcast %cst_11 : f32 to vector<8x1xf32>
    %15 = arith.mulf %11, %14 : vector<8x1xf32>
    %16 = arith.mulf %13, %13 : vector<8x1xf32>
    %17 = arith.subf %15, %16 : vector<8x1xf32>
    %cst_12 = arith.constant 0.000000e+00 : f32
    %18 = vector.broadcast %cst_12 : f32 to vector<8x1xf32>
    %19 = arith.maximumf %17, %18 : vector<8x1xf32>
    %20 = vector.broadcast %13 : vector<8x1xf32> to vector<8x64xf32>
    %21 = arith.subf %4, %20 : vector<8x64xf32>
    %cst_13 = arith.constant 9.99999974E-6 : f32
    %22 = vector.broadcast %cst_13 : f32 to vector<8x1xf32>
    %23 = arith.addf %19, %22 : vector<8x1xf32>
    %24 = math.rsqrt %23 : vector<8x1xf32>
    %25 = vector.broadcast %24 : vector<8x1xf32> to vector<8x64xf32>
    %26 = arith.mulf %21, %25 : vector<8x64xf32>
    %27 = vector.broadcast %5 : vector<8x1xf32> to vector<8x64xf32>
    %28 = arith.mulf %26, %27 : vector<8x64xf32>
    %29 = vector.broadcast %6 : vector<8x1xf32> to vector<8x64xf32>
    %30 = arith.addf %28, %29 : vector<8x64xf32>
    %cst_14 = arith.constant 0.000000e+00 : f32
    %31 = vector.broadcast %cst_14 : f32 to vector<8x64xf32>
    %32 = arith.maximumf %30, %31 : vector<8x64xf32>
    %33 = tpu.iota {dimensions = array<i32: 1>} : vector<1x64xi32>
    %c7_i32 = arith.constant 7 : i32
    %34 = vector.broadcast %c7_i32 : i32 to vector<1x64xi32>
    %35 = arith.andi %33, %34 : vector<1x64xi32>
    %c1_i32 = arith.constant 1 : i32
    %36 = tpu.dynamic_rotate %32 by %c1_i32 dim 1 : vector<8x64xf32>, i32 -> vector<8x64xf32>
    %c1_i32_15 = arith.constant 1 : i32
    %37 = vector.broadcast %c1_i32_15 : i32 to vector<1x64xi32>
    %38 = arith.cmpi sge, %35, %37 : vector<1x64xi32>
    %39 = arith.extui %38 : vector<1x64xi1> to vector<1x64xi32>
    %40 = arith.sitofp %39 : vector<1x64xi32> to vector<1x64xf32>
    %41 = vector.broadcast %40 : vector<1x64xf32> to vector<8x64xf32>
    %42 = arith.mulf %36, %41 : vector<8x64xf32>
    %c63_i32 = arith.constant 63 : i32
    %43 = tpu.dynamic_rotate %32 by %c63_i32 dim 1 : vector<8x64xf32>, i32 -> vector<8x64xf32>
    %c7_i32_16 = arith.constant 7 : i32
    %44 = vector.broadcast %c7_i32_16 : i32 to vector<1x64xi32>
    %45 = arith.cmpi slt, %35, %44 : vector<1x64xi32>
    %46 = arith.extui %45 : vector<1x64xi1> to vector<1x64xi32>
    %47 = arith.sitofp %46 : vector<1x64xi32> to vector<1x64xf32>
    %48 = vector.broadcast %47 : vector<1x64xf32> to vector<8x64xf32>
    %49 = arith.mulf %43, %48 : vector<8x64xf32>
    %cst_17 = arith.constant 0.000000e+00 : f32
    %50 = vector.broadcast %cst_17 : f32 to vector<8x8xf32>
    %cst_18 = arith.constant 0.000000e+00 : f32
    %51 = vector.broadcast %cst_18 : f32 to vector<8x8xf32>
    %52 = tpu.concatenate %50, %42, %51 in 1 : vector<8x8xf32>, vector<8x64xf32>, vector<8x8xf32> -> vector<8x80xf32>
    %cst_19 = arith.constant 0.000000e+00 : f32
    %53 = vector.broadcast %cst_19 : f32 to vector<8x8xf32>
    %cst_20 = arith.constant 0.000000e+00 : f32
    %54 = vector.broadcast %cst_20 : f32 to vector<8x8xf32>
    %55 = tpu.concatenate %53, %32, %54 in 1 : vector<8x8xf32>, vector<8x64xf32>, vector<8x8xf32> -> vector<8x80xf32>
    %cst_21 = arith.constant 0.000000e+00 : f32
    %56 = vector.broadcast %cst_21 : f32 to vector<8x8xf32>
    %cst_22 = arith.constant 0.000000e+00 : f32
    %57 = vector.broadcast %cst_22 : f32 to vector<8x8xf32>
    %58 = tpu.concatenate %56, %49, %57 in 1 : vector<8x8xf32>, vector<8x64xf32>, vector<8x8xf32> -> vector<8x80xf32>
    %59 = vector.extract_strided_slice %52 {offsets = [0, 0], sizes = [8, 64], strides = [1, 1]} : vector<8x80xf32> to vector<8x64xf32>
    %60 = vector.extract_strided_slice %55 {offsets = [0, 0], sizes = [8, 64], strides = [1, 1]} : vector<8x80xf32> to vector<8x64xf32>
    %61 = vector.extract_strided_slice %58 {offsets = [0, 0], sizes = [8, 64], strides = [1, 1]} : vector<8x80xf32> to vector<8x64xf32>
    %62 = vector.extract_strided_slice %52 {offsets = [0, 8], sizes = [8, 64], strides = [1, 1]} : vector<8x80xf32> to vector<8x64xf32>
    %63 = vector.extract_strided_slice %55 {offsets = [0, 8], sizes = [8, 64], strides = [1, 1]} : vector<8x80xf32> to vector<8x64xf32>
    %64 = vector.extract_strided_slice %58 {offsets = [0, 8], sizes = [8, 64], strides = [1, 1]} : vector<8x80xf32> to vector<8x64xf32>
    %65 = vector.extract_strided_slice %52 {offsets = [0, 16], sizes = [8, 64], strides = [1, 1]} : vector<8x80xf32> to vector<8x64xf32>
    %66 = vector.extract_strided_slice %55 {offsets = [0, 16], sizes = [8, 64], strides = [1, 1]} : vector<8x80xf32> to vector<8x64xf32>
    %67 = vector.extract_strided_slice %58 {offsets = [0, 16], sizes = [8, 64], strides = [1, 1]} : vector<8x80xf32> to vector<8x64xf32>
    %68 = tpu.concatenate %59, %60, %61, %62, %63, %64, %65, %66, %67 in 0 : vector<8x64xf32>, vector<8x64xf32>, vector<8x64xf32>, vector<8x64xf32>, vector<8x64xf32>, vector<8x64xf32>, vector<8x64xf32>, vector<8x64xf32>, vector<8x64xf32> -> vector<72x64xf32>
    %c0_23 = arith.constant 0 : index
    %c0_24 = arith.constant 0 : index
    %69 = vector.load %arg3[%c0_23, %c0_24] : memref<8x72xbf16, #tpu.memory_space<vmem>>, vector<8x72xbf16>
    %70 = arith.truncf %68 : vector<72x64xf32> to vector<72x64xbf16>
    %cst_25 = arith.constant dense<0.000000e+00> : vector<8x64xf32>
    %71 = tpu.matmul %69, %70, %cst_25 {dimension_numbers = #tpu.dot_dimension_numbers<[1], [0], [0], [1], [0, 0, 1, 1], [], []>} : vector<8x72xbf16>, vector<72x64xbf16>, vector<8x64xf32> -> vector<8x64xf32>
    %c0_26 = arith.constant 0 : index
    %c0_27 = arith.constant 0 : index
    %72 = vector.load %arg8[%c0_26, %c0_27] : memref<8x1xf32, #tpu.memory_space<vmem>>, vector<8x1xf32>
    %c0_28 = arith.constant 0 : index
    %c0_29 = arith.constant 0 : index
    %73 = vector.load %arg9[%c0_28, %c0_29] : memref<8x1xf32, #tpu.memory_space<vmem>>, vector<8x1xf32>
    %cst_30 = arith.constant dense<0.000000e+00> : vector<8xf32>
    %74 = vector.multi_reduction <add>, %71, %cst_30 [1] : vector<8x64xf32> to vector<8xf32>
    %75 = vector.shape_cast %74 : vector<8xf32> to vector<8x1xf32>
    %76 = arith.mulf %71, %71 : vector<8x64xf32>
    %cst_31 = arith.constant dense<0.000000e+00> : vector<8xf32>
    %77 = vector.multi_reduction <add>, %76, %cst_31 [1] : vector<8x64xf32> to vector<8xf32>
    %78 = vector.shape_cast %77 : vector<8xf32> to vector<8x1xf32>
    %cst_32 = arith.constant 1.562500e-02 : f32
    %79 = vector.broadcast %cst_32 : f32 to vector<8x1xf32>
    %80 = arith.mulf %75, %79 : vector<8x1xf32>
    %cst_33 = arith.constant 1.562500e-02 : f32
    %81 = vector.broadcast %cst_33 : f32 to vector<8x1xf32>
    %82 = arith.mulf %78, %81 : vector<8x1xf32>
    %83 = arith.mulf %80, %80 : vector<8x1xf32>
    %84 = arith.subf %82, %83 : vector<8x1xf32>
    %cst_34 = arith.constant 0.000000e+00 : f32
    %85 = vector.broadcast %cst_34 : f32 to vector<8x1xf32>
    %86 = arith.maximumf %84, %85 : vector<8x1xf32>
    %87 = vector.broadcast %80 : vector<8x1xf32> to vector<8x64xf32>
    %88 = arith.subf %71, %87 : vector<8x64xf32>
    %cst_35 = arith.constant 9.99999974E-6 : f32
    %89 = vector.broadcast %cst_35 : f32 to vector<8x1xf32>
    %90 = arith.addf %86, %89 : vector<8x1xf32>
    %91 = math.rsqrt %90 : vector<8x1xf32>
    %92 = vector.broadcast %91 : vector<8x1xf32> to vector<8x64xf32>
    %93 = arith.mulf %88, %92 : vector<8x64xf32>
    %94 = vector.broadcast %72 : vector<8x1xf32> to vector<8x64xf32>
    %95 = arith.mulf %93, %94 : vector<8x64xf32>
    %96 = vector.broadcast %73 : vector<8x1xf32> to vector<8x64xf32>
    %97 = arith.addf %95, %96 : vector<8x64xf32>
    %cst_36 = arith.constant 0.000000e+00 : f32
    %98 = vector.broadcast %cst_36 : f32 to vector<8x64xf32>
    %99 = arith.maximumf %97, %98 : vector<8x64xf32>
    %c0_37 = arith.constant 0 : index
    %c0_38 = arith.constant 0 : index
    %100 = vector.load %arg4[%c0_37, %c0_38] : memref<16x8xbf16, #tpu.memory_space<vmem>>, vector<16x8xbf16>
    %101 = arith.truncf %99 : vector<8x64xf32> to vector<8x64xbf16>
    %cst_39 = arith.constant dense<0.000000e+00> : vector<16x64xf32>
    %102 = tpu.matmul %100, %101, %cst_39 {dimension_numbers = #tpu.dot_dimension_numbers<[1], [0], [0], [1], [0, 0, 1, 1], [], []>} : vector<16x8xbf16>, vector<8x64xbf16>, vector<16x64xf32> -> vector<16x64xf32>
    %c0_40 = arith.constant 0 : index
    %c0_41 = arith.constant 0 : index
    %103 = vector.load %arg10[%c0_40, %c0_41] : memref<16x1xf32, #tpu.memory_space<vmem>>, vector<16x1xf32>
    %c0_42 = arith.constant 0 : index
    %c0_43 = arith.constant 0 : index
    %104 = vector.load %arg11[%c0_42, %c0_43] : memref<16x1xf32, #tpu.memory_space<vmem>>, vector<16x1xf32>
    %cst_44 = arith.constant dense<0.000000e+00> : vector<16xf32>
    %105 = vector.multi_reduction <add>, %102, %cst_44 [1] : vector<16x64xf32> to vector<16xf32>
    %106 = vector.shape_cast %105 : vector<16xf32> to vector<16x1xf32>
    %107 = arith.mulf %102, %102 : vector<16x64xf32>
    %cst_45 = arith.constant dense<0.000000e+00> : vector<16xf32>
    %108 = vector.multi_reduction <add>, %107, %cst_45 [1] : vector<16x64xf32> to vector<16xf32>
    %109 = vector.shape_cast %108 : vector<16xf32> to vector<16x1xf32>
    %cst_46 = arith.constant 1.562500e-02 : f32
    %110 = vector.broadcast %cst_46 : f32 to vector<16x1xf32>
    %111 = arith.mulf %106, %110 : vector<16x1xf32>
    %cst_47 = arith.constant 1.562500e-02 : f32
    %112 = vector.broadcast %cst_47 : f32 to vector<16x1xf32>
    %113 = arith.mulf %109, %112 : vector<16x1xf32>
    %114 = arith.mulf %111, %111 : vector<16x1xf32>
    %115 = arith.subf %113, %114 : vector<16x1xf32>
    %cst_48 = arith.constant 0.000000e+00 : f32
    %116 = vector.broadcast %cst_48 : f32 to vector<16x1xf32>
    %117 = arith.maximumf %115, %116 : vector<16x1xf32>
    %118 = vector.broadcast %111 : vector<16x1xf32> to vector<16x64xf32>
    %119 = arith.subf %102, %118 : vector<16x64xf32>
    %cst_49 = arith.constant 9.99999974E-6 : f32
    %120 = vector.broadcast %cst_49 : f32 to vector<16x1xf32>
    %121 = arith.addf %117, %120 : vector<16x1xf32>
    %122 = math.rsqrt %121 : vector<16x1xf32>
    %123 = vector.broadcast %122 : vector<16x1xf32> to vector<16x64xf32>
    %124 = arith.mulf %119, %123 : vector<16x64xf32>
    %125 = vector.broadcast %103 : vector<16x1xf32> to vector<16x64xf32>
    %126 = arith.mulf %124, %125 : vector<16x64xf32>
    %127 = vector.broadcast %104 : vector<16x1xf32> to vector<16x64xf32>
    %128 = arith.addf %126, %127 : vector<16x64xf32>
    %c0_50 = arith.constant 0 : index
    %c0_51 = arith.constant 0 : index
    %129 = vector.load %arg5[%c0_50, %c0_51] : memref<16x4xbf16, #tpu.memory_space<vmem>>, vector<16x4xbf16>
    %cst_52 = arith.constant dense<0.000000e+00> : vector<16x64xf32>
    %130 = tpu.matmul %129, %2, %cst_52 {dimension_numbers = #tpu.dot_dimension_numbers<[1], [0], [0], [1], [0, 0, 1, 1], [], []>} : vector<16x4xbf16>, vector<4x64xbf16>, vector<16x64xf32> -> vector<16x64xf32>
    %c0_53 = arith.constant 0 : index
    %c0_54 = arith.constant 0 : index
    %131 = vector.load %arg12[%c0_53, %c0_54] : memref<16x1xf32, #tpu.memory_space<vmem>>, vector<16x1xf32>
    %c0_55 = arith.constant 0 : index
    %c0_56 = arith.constant 0 : index
    %132 = vector.load %arg13[%c0_55, %c0_56] : memref<16x1xf32, #tpu.memory_space<vmem>>, vector<16x1xf32>
    %cst_57 = arith.constant dense<0.000000e+00> : vector<16xf32>
    %133 = vector.multi_reduction <add>, %130, %cst_57 [1] : vector<16x64xf32> to vector<16xf32>
    %134 = vector.shape_cast %133 : vector<16xf32> to vector<16x1xf32>
    %135 = arith.mulf %130, %130 : vector<16x64xf32>
    %cst_58 = arith.constant dense<0.000000e+00> : vector<16xf32>
    %136 = vector.multi_reduction <add>, %135, %cst_58 [1] : vector<16x64xf32> to vector<16xf32>
    %137 = vector.shape_cast %136 : vector<16xf32> to vector<16x1xf32>
    %cst_59 = arith.constant 1.562500e-02 : f32
    %138 = vector.broadcast %cst_59 : f32 to vector<16x1xf32>
    %139 = arith.mulf %134, %138 : vector<16x1xf32>
    %cst_60 = arith.constant 1.562500e-02 : f32
    %140 = vector.broadcast %cst_60 : f32 to vector<16x1xf32>
    %141 = arith.mulf %137, %140 : vector<16x1xf32>
    %142 = arith.mulf %139, %139 : vector<16x1xf32>
    %143 = arith.subf %141, %142 : vector<16x1xf32>
    %cst_61 = arith.constant 0.000000e+00 : f32
    %144 = vector.broadcast %cst_61 : f32 to vector<16x1xf32>
    %145 = arith.maximumf %143, %144 : vector<16x1xf32>
    %146 = vector.broadcast %139 : vector<16x1xf32> to vector<16x64xf32>
    %147 = arith.subf %130, %146 : vector<16x64xf32>
    %cst_62 = arith.constant 9.99999974E-6 : f32
    %148 = vector.broadcast %cst_62 : f32 to vector<16x1xf32>
    %149 = arith.addf %145, %148 : vector<16x1xf32>
    %150 = math.rsqrt %149 : vector<16x1xf32>
    %151 = vector.broadcast %150 : vector<16x1xf32> to vector<16x64xf32>
    %152 = arith.mulf %147, %151 : vector<16x64xf32>
    %153 = vector.broadcast %131 : vector<16x1xf32> to vector<16x64xf32>
    %154 = arith.mulf %152, %153 : vector<16x64xf32>
    %155 = vector.broadcast %132 : vector<16x1xf32> to vector<16x64xf32>
    %156 = arith.addf %154, %155 : vector<16x64xf32>
    %157 = arith.addf %128, %156 : vector<16x64xf32>
    %cst_63 = arith.constant 0.000000e+00 : f32
    %158 = vector.broadcast %cst_63 : f32 to vector<16x64xf32>
    %159 = arith.maximumf %157, %158 : vector<16x64xf32>
    %c0_64 = arith.constant 0 : index
    %c0_65 = arith.constant 0 : index
    %c0_66 = arith.constant 0 : index
    %160 = vector.load %arg14[%c0_64, %c0_65, %c0_66] : memref<1x16x64xf32, #tpu.memory_space<vmem>>, vector<1x16x64xf32>
    %161 = vector.shape_cast %160 : vector<1x16x64xf32> to vector<16x64xf32>
    %162 = vector.shape_cast %159 : vector<16x64xf32> to vector<1x16x64xf32>
    tpu.vector_store %arg14[%c0_64, %c0_65, %c0_66], %162 {strides = array<i32>} : memref<1x16x64xf32, #tpu.memory_space<vmem>>, vector<1x16x64xf32>,
    return
  }
  func.func @transform_0(%arg0: i32) -> (i32, i32, i32) {
    %c0_i32 = arith.constant 0 : i32
    %c0_i32_0 = arith.constant 0 : i32
    %c0_i32_1 = arith.constant 0 : i32
    return %arg0, %c0_i32, %c0_i32_0 : i32, i32, i32
  }
  func.func @transform_1(%arg0: i32) -> (i32, i32) {
    %c0_i32 = arith.constant 0 : i32
    %c0_i32_0 = arith.constant 0 : i32
    %c0_i32_1 = arith.constant 0 : i32
    return %c0_i32, %c0_i32_0 : i32, i32
  }
  func.func @transform_2(%arg0: i32) -> (i32, i32) {
    %c0_i32 = arith.constant 0 : i32
    %c0_i32_0 = arith.constant 0 : i32
    %c0_i32_1 = arith.constant 0 : i32
    return %c0_i32, %c0_i32_0 : i32, i32
  }
  func.func @transform_3(%arg0: i32) -> (i32, i32) {
    %c0_i32 = arith.constant 0 : i32
    %c0_i32_0 = arith.constant 0 : i32
    %c0_i32_1 = arith.constant 0 : i32
    return %c0_i32, %c0_i32_0 : i32, i32
  }
  func.func @transform_4(%arg0: i32) -> (i32, i32) {
    %c0_i32 = arith.constant 0 : i32
    %c0_i32_0 = arith.constant 0 : i32
    %c0_i32_1 = arith.constant 0 : i32
    return %c0_i32, %c0_i32_0 : i32, i32
  }
  func.func @transform_5(%arg0: i32) -> (i32, i32) {
    %c0_i32 = arith.constant 0 : i32
    %c0_i32_0 = arith.constant 0 : i32
    %c0_i32_1 = arith.constant 0 : i32
    return %c0_i32, %c0_i32_0 : i32, i32
  }
  func.func @transform_6(%arg0: i32) -> (i32, i32) {
    %c0_i32 = arith.constant 0 : i32
    %c0_i32_0 = arith.constant 0 : i32
    %c0_i32_1 = arith.constant 0 : i32
    return %c0_i32, %c0_i32_0 : i32, i32
  }
  func.func @transform_7(%arg0: i32) -> (i32, i32) {
    %c0_i32 = arith.constant 0 : i32
    %c0_i32_0 = arith.constant 0 : i32
    %c0_i32_1 = arith.constant 0 : i32
    return %c0_i32, %c0_i32_0 : i32, i32
  }
  func.func @transform_8(%arg0: i32) -> (i32, i32) {
    %c0_i32 = arith.constant 0 : i32
    %c0_i32_0 = arith.constant 0 : i32
    %c0_i32_1 = arith.constant 0 : i32
    return %c0_i32, %c0_i32_0 : i32, i32
  }
  func.func @transform_9(%arg0: i32) -> (i32, i32) {
    %c0_i32 = arith.constant 0 : i32
    %c0_i32_0 = arith.constant 0 : i32
    %c0_i32_1 = arith.constant 0 : i32
    return %c0_i32, %c0_i32_0 : i32, i32
  }
  func.func @transform_10(%arg0: i32) -> (i32, i32) {
    %c0_i32 = arith.constant 0 : i32
    %c0_i32_0 = arith.constant 0 : i32
    %c0_i32_1 = arith.constant 0 : i32
    return %c0_i32, %c0_i32_0 : i32, i32
  }
  func.func @transform_11(%arg0: i32) -> (i32, i32) {
    %c0_i32 = arith.constant 0 : i32
    %c0_i32_0 = arith.constant 0 : i32
    %c0_i32_1 = arith.constant 0 : i32
    return %c0_i32, %c0_i32_0 : i32, i32
  }
  func.func @transform_12(%arg0: i32) -> (i32, i32) {
    %c0_i32 = arith.constant 0 : i32
    %c0_i32_0 = arith.constant 0 : i32
    %c0_i32_1 = arith.constant 0 : i32
    return %c0_i32, %c0_i32_0 : i32, i32
  }
  func.func @transform_13(%arg0: i32) -> (i32, i32, i32) {
    %c0_i32 = arith.constant 0 : i32
    %c0_i32_0 = arith.constant 0 : i32
    %c0_i32_1 = arith.constant 0 : i32
    return %arg0, %c0_i32, %c0_i32_0 : i32, i32, i32
  }
}

</mosaic_0001>

<bundles_post_ra>
// kernel: res_block_forward.1
= control target key start
LH: loop header
LB: loop body
LE: loop exit
PB: predicated region body
PF: predicated region fallthrough
CT: control target
= control target key end

     0   :  { %s1165_s25 = smov 0   ;;  %s1309_s0 = inlined_call_operand.vmem [shape: f32[2,4,64], index: 0, kind: input, shape index: {}]   ;;  %s1310_s1 = inlined_call_operand.vmem [shape: bf16[8,4], index: 1, kind: input, shape index: {}]   ;;  %s1311_s2 = inlined_call_operand.vmem [shape: bf16[8,72], index: 2, kind: input, shape index: {}]   ;;  %s1312_s3 = inlined_call_operand.vmem [shape: bf16[16,8], index: 3, kind: input, shape index: {}]   ;;  %s1313_s4 = inlined_call_operand.vmem [shape: bf16[16,4], index: 4, kind: input, shape index: {}]   ;;  %s1314_s5 = inlined_call_operand.vmem [shape: f32[8,1], index: 5, kind: input, shape index: {}]   ;;  %s1315_s6 = inlined_call_operand.vmem [shape: f32[8,1], index: 6, kind: input, shape index: {}]   ;;  %s1316_s7 = inlined_call_operand.vmem [shape: f32[8,1], index: 7, kind: input, shape index: {}]   ;;  %s1317_s8 = inlined_call_operand.vmem [shape: f32[8,1], index: 8, kind: input, shape index: {}]   ;;  %s1318_s9 = inlined_call_operand.vmem [shape: f32[16,1], index: 9, kind: input, shape index: {}]   ;;  %s1319_s10 = inlined_call_operand.vmem [shape: f32[16,1], index: 10, kind: input, shape index: {}]   ;;  %s1320_s11 = inlined_call_operand.vmem [shape: f32[16,1], index: 11, kind: input, shape index: {}]   ;;  %s1321_s12 = inlined_call_operand.vmem [shape: f32[16,1], index: 12, kind: input, shape index: {}]   ;;  %s1322_s13 = inlined_call_operand.vmem [shape: f32[2,16,64], index: 13, kind: output, shape index: {}]  }
   0x1 LB: > { %s960_s26 = sadd.s32 4294967295, %s1081_s25   ;;  %p964_p0 = scmp.ge.s32.totalorder %s1081_s25, 1  ;;  %s1081_s25 = sphi %s1165_s25, %s23_s25  }
   0x2   : > { %p386_p1 = scmp.lt.s32.totalorder %s1081_s25, 3 }
   0x4   : > { %p387_p2 = pnand %p964_p0, %p386_p1 }
   0x5   : > { %p429_p3 = scmp.lt.s32.totalorder (!%p387_p2), %s960_s26, 1  ;;  %s1086_s20 = smov (!%p387_p2), 64  }
   0x6   : > { %390 = sbr.rel (%p387_p2) target bundleno = 1640 (0x668), region = 72  ;;  %s1087_s21 = smov (!%p387_p2), 1  }
   0x7   : > { %s1088_s22 = smov (!%p387_p2), 63   ;;  %s1089_s23 = smov (!%p387_p2), 7  }
   0x8   : > { %s1090_s24 = smov (!%p387_p2), 73   ;;  %s1092_s28 = smov (!%p387_p2), 112  }
   0x9   : > { %s1093_s29 = smov (!%p387_p2), 120  }
   0xb   : > { %v1083_v0 = vmov 0.0   ;;  %vm1084_vm0 = vmmov 0   ;;  %s1324_s26 = smov (!%p429_p3, %s960_s26), 1  ;;  %vm446_vm1 = vcmask 1041408   ;;  %v441_v4 = vld [vmem:[%s1310_s1] sm:$0xf]  ;;  %v522_v31 = vlaneseq }
   0xc   : > { %997 = vmatprep.subr.bf16.mxu0 %v1083_v0  ;;  %999 = vmatprep.mubr.msk.bf16.mxu0 %vm1084_vm0, %v1083_v0  ;;  %s965_s27 = sshll.u32 %s1324_s26, 2  ;;  %vm442_vm2 = vcmask 31744   ;;  %v490_v5 = vld [vmem:[%s1314_s5] sm:$0xff]  ;;  %v1085_v6 = vmov 0   ;;  %vm492_vm3 = vcmask 523264   ;;  %vm525_vm4 = vcmask 1048064  }
   0xd   : > { %1003 = vmatprep.subr.bf16.mxu1 %v1083_v0  ;;  %1013 = vmatprep.mubr.msk.bf16.mxu1 %vm1084_vm0, %v1083_v0  ;;  %s432_s30 = scalar_lea.vmem %s1309_s0, %s965_s27  ;;  %v491_v7 = vld [vmem:[%s1315_s6] sm:$0xff]  ;;  %v523_v32 = vand.u32 127, %v522_v31  ;;  %s1091_s27 = smov 8   ;;  %vm552_vm7 = vcmask 64512   ;;  %vm554_vm8 = vcmask 588800   ;;  %vm598_vm9 = vcmask 1043456  }
   0xe   : > { %v439_v1 = vld [vmem:[%s432_s30] sm:$0xf]  ;;  %1049 = vset.pattern.permute.xlu1 %v1085_v6  ;;  %1060 = vset.pattern.permute.xlu0 %v1085_v6  ;;  %vm1094_vm10 = vmmov 1   ;;  %vm974_vm12 = vmpackc.low %vm554_vm8, %vm554_vm8 }
   0xf   : > { %v440_v2 = vpack.c.bf16 %v439_v1, %v439_v1  ;;  %511 = vperm.xlu1 %1049, %v490_v5   ;;  %v524_v33 = vand.u32 7, %v523_v32  ;;  %vm971_vm11 = vmpackc.low %vm1094_vm10, %vm554_vm8 }
  0x11   : > { %v1185_v3 = vsel %vm446_vm1, %v440_v2, 0  ;;  %vm540_vm5 = vcmp.lt.s32.totalorder %v524_v33, 7  ;;  %vm532_vm6 = vcmp.ge.s32.totalorder %v524_v33, 1 }
  0x12   : > { %998 = vmatpush3.bf16.msra.mxu0 %v1185_v3  ;;  %v970_v36 = vsel %vm540_vm5, 1.0, %v1083_v0  ;;  %v969_v37 = vsel %vm532_vm6, 1.0, %v1083_v0 }
  0x13   : > { %1017 = vmatprep.subr.bf16.mxu0 %v1083_v0  ;;  %517 = vperm.xlu1 %1049, %v491_v7   ;;  %v589_v7 = vld [vmem:[%s1311_s2] sm:$0xf] }
  0x15   : > { %1000 = vmatmul.mubr.msk.bf16.vlgmr.msra.gmra.mxu0 %vm442_vm2, %v441_v4 }
  0x16   : > { %1019 = vmatprep.mubr.msk.bf16.mxu0 %vm1084_vm0, %v1083_v0 }
  0x8a   : > { %v512_v23 = vpop.permute.xlu1 %511 }
  0x8e   : > { %v518_v28 = vpop.permute.xlu1 %517 }
  0xd5   : > { %v484_v8 = vpop.f32.mrf.mxu0 }
  0xd6   : > { %v493_v9 = vsel %vm492_vm3, %v484_v8, 0.0  ;;  %v496_v10 = vmul.f32 %v484_v8, %v484_v8 }
  0xd7   : > { %494 = vadd.xlane.f32.xlu0 %v493_v9  ;;  %v1001_v11 = vpop.f32.mrf.mxu0 }
  0xd8   : > { %v497_v13 = vsel %vm492_vm3, %v496_v10, 0.0 }
  0xd9   : > { %v487_v12 = vpop.f32.mrf.mxu0 }
  0xdb   : > { %498 = vadd.xlane.f32.xlu0 %v497_v13  ;;  %v1002_v14 = vpop.f32.mrf.mxu0 }
 0x160   : > { %v495_v15 = vpop.xlane.xlu0 %494 }
 0x161   : > { %v500_v16 = vmul.f32 0.015625, %v495_v15  ;;  %v643_v15 = vld [vmem:[%s1317_s8] sm:$0xff] }
 0x163   : > { %v502_v18 = vmul.f32 %v500_v16, %v500_v16  ;;  %v505_v24 = vsub.f32 %v484_v8, %v500_v16  ;;  %v642_v16 = vld [vmem:[%s1316_s7] sm:$0xff] }
 0x164   : > { %v499_v17 = vpop.xlane.xlu0 %498 }
 0x165   : > { %v501_v19 = vmul.f32 0.015625, %v499_v17  ;;  %v729_v17 = vld [vmem:[%s1318_s9 + $0x8] sm:$0xff] }
 0x167   : > { %v503_v20 = vsub.f32 %v501_v19, %v502_v18  ;;  %v728_v18 = vld [vmem:[%s1318_s9] sm:$0xff] }
 0x168   : > { %v839_v19 = vld [vmem:[%s1320_s11] sm:$0xff] }
 0x169   : > { %v504_v21 = vmax.f32 %v503_v20, 0.0  ;;  %v840_v20 = vld [vmem:[%s1320_s11 + $0x8] sm:$0xff] }
 0x16b   : > { %v506_v22 = vadd.f32 1e-05, %v504_v21  ;;  %v730_v21 = vld [vmem:[%s1319_s10] sm:$0xff] }
 0x16d   : > { %1063 = vrsqrt.f32 %v506_v22 }
 0x17a   : > { %v1064_v25 = vpop.eup %1063 }
 0x17b   : > { %v508_v26 = vmul.f32 %v1064_v25, %v505_v24 }
 0x17d   : > { %v514_v27 = vmul.f32 %v512_v23, %v508_v26 }
 0x17f   : > { %v520_v29 = vadd.f32 %v518_v28, %v514_v27 }
 0x181   : > { %v521_v30 = vmax.f32 %v520_v29, 0.0 }
 0x183   : > { %526 = vrot.lane.b32.xlu0 %v521_v30, %s1086_s20 }
 0x1f5   : > { %v527_v34 = vpop.permute.xlu0 %526 }
 0x1f6   : > { %v528_v35 = vsel %vm525_vm4, %v527_v34, %v521_v30 }
 0x1f7   : > { %529 = vrot.lane.b32.xlu1 %v528_v35, %s1086_s20 }
 0x1fb   : > { %544 = vrot.lane.b32.xlu1 %v970_v36, %s1087_s21 }
 0x1ff   : > { %536 = vrot.lane.b32.xlu1 %v969_v37, %s1088_s22 }
 0x269   : > { %v530_v38 = vpop.permute.xlu1 %529 }
 0x26a   : > { %v531_v39 = vsel %vm525_vm4, %v530_v38, %v521_v30 }
 0x26d   : > { %v545_v40 = vpop.permute.xlu1 %544 }
 0x26e   : > { %v547_v41 = vmul.f32 %v545_v40, %v531_v39  ;;  %v1061_v40 = vld [vmem:[%s1312_s3] sm:$0xff]  }
 0x270   : > { %563 = vrot.lane.b32.xlu1 %v547_v41, %s1089_s23  ;;  %v1062_v41 = vld [vmem:[%s1313_s4] sm:$0xff]  }
 0x271   : > { %v537_v42 = vpop.permute.xlu1 %536 }
 0x272   : > { %v539_v43 = vmul.f32 %v537_v42, %v531_v39 }
 0x274   : > { %549 = vrot.lane.b32.xlu1 %v539_v43, %s1090_s24  ;;  %s984_s24 = sshll.u32 %s1324_s26, 4 }
 0x278   : > { %557 = vrot.lane.b32.xlu1 %v521_v30, %s1091_s27 }
 0x2e2   : > { %v564_v44 = vpop.permute.xlu1 %563 }
 0x2e3   : > { %v566_v45 = vsel %vm552_vm7, 0.0, %v564_v44 }
 0x2e4   : > { %v567_v46 = vsel %vm554_vm8, %v566_v45, 0.0 }
 0x2e5   : > { %586 = vrot.lane.b32.xlu0 %v567_v46, %s1092_s28 }
 0x2e6   : > { %v550_v47 = vpop.permute.xlu1 %549 }
 0x2e7   : > { %v553_v48 = vsel %vm552_vm7, 0.0, %v550_v47 }
 0x2e8   : > { %v555_v51 = vsel %vm554_vm8, %v553_v48, 0.0 }
 0x2ea   : > { %v558_v49 = vpop.permute.xlu1 %557 }
 0x2eb   : > { %v560_v50 = vsel %vm552_vm7, 0.0, %v558_v49 }
 0x2ec   : > { %v561_v52 = vsel %vm554_vm8, %v560_v50, 0.0  ;;  %v975_v53 = vpack.c.bf16 %v560_v50, %v553_v48 }
 0x2ed   : > { %v1055_v54 = vpack.i.bf16 %v567_v46, %v561_v52  ;;  %v1050_v55 = vpack.i.bf16 %v561_v52, %v555_v51 }
 0x2ef   : > { %1056 = vrot.lane.b32.xlu0 %v1055_v54, %s1093_s29  ;;  %1051 = vrot.lane.b32.xlu1 %v1050_v55, %s1092_s28 }
 0x2f3   : > { %569 = vrot.lane.b32.xlu1 %v555_v51, %s1093_s29  ;;  %s437_s29 = scalar_lea.vmem %s1322_s13, %s984_s24 }
 0x357   : > { %v587_v56 = vpop.permute.xlu0 %586 }
 0x358   : > { %v594_v57 = vpack.c.bf16 %v587_v56, %v587_v56 }
 0x35a   : > { %v600_v58 = vsel %vm598_vm9, %v594_v57, 0 }
 0x35b   : > { %1004 = vmatpush3.bf16.msra.mxu1 %v600_v58 }
 0x35c   : > { %1005 = vmatprep.subr.bf16.mxu1 %v1083_v0 }
 0x361   : > { %v1057_v59 = vpop.permute.xlu0 %1056  ;;  %v1052_v60 = vpop.permute.xlu1 %1051 }
 0x362   : > { %v1054_v61 = vunpack.i.h.bf16 %v1052_v60  ;;  %v1053_v62 = vunpack.i.l.bf16 %v1052_v60  ;;  %v1059_v63 = vunpack.i.h.bf16 %v1057_v59  ;;  %v1058_v1 = vunpack.i.l.bf16 %v1057_v59  ;;  %v731_v60 = vld [vmem:[%s1319_s10 + $0x8] sm:$0xff] }
 0x364   : > { %v593_v2 = vpack.c.bf16 %v1054_v61, %v1053_v62  ;;  %v592_v4 = vpack.c.bf16 %v1059_v63, %v1058_v1  ;;  %v842_v61 = vld [vmem:[%s1321_s12 + $0x8] sm:$0xff]  ;;  %v841_v62 = vld [vmem:[%s1321_s12] sm:$0xff] }
 0x365   : > { %v570_v5 = vpop.permute.xlu1 %569 }
 0x366   : > { %1006 = vmatpush3.bf16.msra.mxu1 %v593_v2  ;;  %v972_v6 = vpack.c.bf16 %v570_v5, %v566_v45 }
 0x367   : > { %1007 = vmatprep.subr.bf16.mxu1 %v1083_v0 }
 0x36a   : > { %1008 = vmatpush3.bf16.msra.mxu1 %v592_v4 }
 0x36b   : > { %1009 = vmatprep.subr.bf16.mxu1 %v1083_v0 }
 0x36e   : > { %1010 = vmatpush3.bf16.msk.msra.mxu1 %vm971_vm11, %v972_v6 }
 0x36f   : > { %1011 = vmatprep.subr.bf16.mxu1 %v1083_v0 }
 0x372   : > { %1012 = vmatpush3.bf16.msk.msra.mxu1 %vm974_vm12, %v975_v53 }
 0x375   : > { %1014 = vmatmul.mubr.msk.bf16.vlgmr.msra.gmra.mxu1 %vm554_vm8, %v589_v7 }
 0x435   : > { %v636_v8 = vpop.f32.mrf.mxu1 }
 0x436   : > { %v644_v9 = vsel %vm492_vm3, %v636_v8, 0.0  ;;  %v647_v10 = vmul.f32 %v636_v8, %v636_v8 }
 0x437   : > { %645 = vadd.xlane.f32.xlu0 %v644_v9  ;;  %v1015_v11 = vpop.f32.mrf.mxu1 }
 0x438   : > { %v648_v12 = vsel %vm492_vm3, %v647_v10, 0.0 }
 0x439   : > { %649 = vadd.xlane.f32.xlu1 %v648_v12  ;;  %v639_v13 = vpop.f32.mrf.mxu1 }
 0x43b   : > { %v1016_v14 = vpop.f32.mrf.mxu1 }
 0x44a   : > { %668 = vperm.xlu1 %1049, %v643_v15  }
 0x44d   : > { %662 = vperm.xlu0 %1060, %v642_v16  }
 0x44e   : > { %771 = vperm.xlu1 %1049, %v729_v17  }
 0x451   : > { %766 = vperm.xlu0 %1060, %v728_v18  }
 0x452   : > { %877 = vperm.xlu1 %1049, %v839_v19  }
 0x455   : > { %882 = vperm.xlu0 %1060, %v840_v20  }
 0x456   : > { %778 = vperm.xlu1 %1049, %v730_v21  }
 0x4c0   : > { %v646_v22 = vpop.xlane.xlu0 %645 }
 0x4c1   : > { %v651_v23 = vmul.f32 0.015625, %v646_v22 }
 0x4c2   : > { %v650_v24 = vpop.xlane.xlu1 %649 }
 0x4c3   : > { %v653_v25 = vmul.f32 %v651_v23, %v651_v23  ;;  %v652_v26 = vmul.f32 0.015625, %v650_v24  ;;  %v656_v30 = vsub.f32 %v636_v8, %v651_v23 }
 0x4c5   : > { %v654_v27 = vsub.f32 %v652_v26, %v653_v25 }
 0x4c6   : > { %v669_v35 = vpop.permute.xlu1 %668 }
 0x4c7   : > { %v655_v28 = vmax.f32 %v654_v27, 0.0 }
 0x4c8   : > { %v663_v33 = vpop.permute.xlu0 %662 }
 0x4c9   : > { %v657_v29 = vadd.f32 1e-05, %v655_v28 }
 0x4ca   : > { %v772_v63 = vpop.permute.xlu1 %771 }
 0x4cb   : > { %1065 = vrsqrt.f32 %v657_v29 }
 0x4cc   : > { %v767_v2 = vpop.permute.xlu0 %766 }
 0x4ce   : > { %v878_v1 = vpop.permute.xlu1 %877 }
 0x4d0   : > { %v883_v5 = vpop.permute.xlu0 %882 }
 0x4d2   : > { %v779_v4 = vpop.permute.xlu1 %778 }
 0x4d8   : > { %v1066_v31 = vpop.eup %1065 }
 0x4d9   : > { %v659_v32 = vmul.f32 %v1066_v31, %v656_v30 }
 0x4db   : > { %v665_v34 = vmul.f32 %v663_v33, %v659_v32 }
 0x4dd   : > { %v671_v36 = vadd.f32 %v669_v35, %v665_v34 }
 0x4df   : > { %v672_v37 = vmax.f32 %v671_v36, 0.0 }
 0x4e1   : > { %v675_v38 = vpack.c.bf16 %v672_v37, %v672_v37 }
 0x4e3   : > { %v685_v39 = vsel %vm598_vm9, %v675_v38, 0 }
 0x4e4   : > { %1018 = vmatpush3.bf16.msra.mxu0 %v685_v39 }
 0x4e5   : > { %1023 = vmatprep.subr.bf16.mxu0 %v1083_v0 }
 0x4e7   : > { %1020 = vmatmul.mubr.msk.bf16.vlgmr.msra.gmra.mxu0 %vm552_vm7, %v1061_v40 }
 0x4e8   : > { %1024 = vmatpush3.bf16.msra.mxu0 %v1185_v3  ;;  %1025 = vmatprep.mubr.msk.bf16.mxu0 %vm1084_vm0, %v1083_v0 }
 0x4ef   : > { %1026 = vmatmul.mubr.msk.bf16.vlgmr.msra.gmra.mxu0 %vm442_vm2, %v1062_v41 }
 0x5a7   : > { %v1259_v42 = vpop.f32.mrf.mxu0 }
 0x5a8   : > { %v732_v43 = vsel %vm492_vm3, %v1259_v42, 0.0  ;;  %v738_v44 = vmul.f32 %v1259_v42, %v1259_v42 }
 0x5a9   : > { %733 = vadd.xlane.f32.xlu1 %v732_v43  ;;  %v1021_v45 = vpop.f32.mrf.mxu0 }
 0x5aa   : > { %v740_v0 = vsel %vm492_vm3, %v738_v44, 0.0 }
 0x5ab   : > { %v1265_v3 = vpop.f32.mrf.mxu0 }
 0x5ac   : > { %v735_v46 = vsel %vm492_vm3, %v1265_v3, 0.0  ;;  %v739_v47 = vmul.f32 %v1265_v3, %v1265_v3 }
 0x5ad   : > { %741 = vadd.xlane.f32.xlu1 %v740_v0  ;;  %736 = vadd.xlane.f32.xlu0 %v735_v46  ;;  %v1022_v48 = vpop.f32.mrf.mxu0 }
 0x5ae   : > { %v743_v50 = vsel %vm492_vm3, %v739_v47, 0.0 }
 0x5af   : > { %v1272_v49 = vpop.f32.mrf.mxu0 }
 0x5b0   : > { %v849_v51 = vmul.f32 %v1272_v49, %v1272_v49  ;;  %v843_v54 = vsel %vm492_vm3, %v1272_v49, 0.0 }
 0x5b1   : > { %744 = vadd.xlane.f32.xlu1 %v743_v50  ;;  %v1027_v52 = vpop.f32.mrf.mxu0 }
 0x5b2   : > { %v851_v53 = vsel %vm492_vm3, %v849_v51, 0.0 }
 0x5b3   : > { %852 = vadd.xlane.f32.xlu0 %v851_v53  ;;  %v1280_v55 = vpop.f32.mrf.mxu0 }
 0x5b4   : > { %v846_v57 = vsel %vm492_vm3, %v1280_v55, 0.0  ;;  %v850_v58 = vmul.f32 %v1280_v55, %v1280_v55 }
 0x5b5   : > { %844 = vadd.xlane.f32.xlu1 %v843_v54  ;;  %v1028_v56 = vpop.f32.mrf.mxu0 }
 0x5b6   : > { %v854_v59 = vsel %vm492_vm3, %v850_v58, 0.0 }
 0x5b9   : > { %847 = vadd.xlane.f32.xlu1 %v846_v57 }
 0x5bd   : > { %855 = vadd.xlane.f32.xlu1 %v854_v59 }
 0x5c9   : > { %783 = vperm.xlu0 %1060, %v731_v60  }
 0x5cd   : > { %894 = vperm.xlu0 %1060, %v842_v61  }
 0x5ce   : > { %889 = vperm.xlu1 %1049, %v841_v62  }
 0x632   : > { %v734_v6 = vpop.xlane.xlu1 %733 }
 0x633   : > { %v746_v7 = vmul.f32 0.015625, %v734_v6 }
 0x635   : > { %v750_v10 = vmul.f32 %v746_v7, %v746_v7  ;;  %v756_v39 = vsub.f32 %v1259_v42, %v746_v7 }
 0x636   : > { %v742_v8 = vpop.xlane.xlu1 %741  ;;  %v737_v9 = vpop.xlane.xlu0 %736 }
 0x637   : > { %v748_v11 = vmul.f32 0.015625, %v742_v8  ;;  %v747_v12 = vmul.f32 0.015625, %v737_v9 }
 0x639   : > { %v752_v13 = vsub.f32 %v748_v11, %v750_v10  ;;  %v751_v16 = vmul.f32 %v747_v12, %v747_v12  ;;  %v757_v45 = vsub.f32 %v1265_v3, %v747_v12 }
 0x63a   : > { %v745_v14 = vpop.xlane.xlu1 %744 }
 0x63b   : > { %v754_v15 = vmax.f32 %v752_v13, 0.0  ;;  %v749_v17 = vmul.f32 0.015625, %v745_v14 }
 0x63c   : > { %v853_v18 = vpop.xlane.xlu0 %852 }
 0x63d   : > { %v753_v19 = vsub.f32 %v749_v17, %v751_v16  ;;  %v758_v21 = vadd.f32 1e-05, %v754_v15  ;;  %v859_v23 = vmul.f32 0.015625, %v853_v18 }
 0x63e   : > { %v845_v20 = vpop.xlane.xlu1 %844 }
 0x63f   : > { %v857_v22 = vmul.f32 0.015625, %v845_v20  ;;  %v755_v24 = vmax.f32 %v753_v19, 0.0  ;;  %1067 = vrsqrt.f32 %v758_v21 }
 0x641   : > { %v861_v25 = vmul.f32 %v857_v22, %v857_v22  ;;  %v759_v29 = vadd.f32 1e-05, %v755_v24  ;;  %v867_v43 = vsub.f32 %v1272_v49, %v857_v22 }
 0x642   : > { %v848_v26 = vpop.xlane.xlu1 %847 }
 0x643   : > { %v863_v27 = vsub.f32 %v859_v23, %v861_v25  ;;  %v858_v28 = vmul.f32 0.015625, %v848_v26  ;;  %1069 = vrsqrt.f32 %v759_v29 }
 0x644   : > { %v784_v50 = vpop.permute.xlu0 %783 }
 0x645   : > { %v865_v30 = vmax.f32 %v863_v27, 0.0  ;;  %v862_v33 = vmul.f32 %v858_v28, %v858_v28  ;;  %v868_v52 = vsub.f32 %v1280_v55, %v858_v28 }
 0x646   : > { %v856_v31 = vpop.xlane.xlu1 %855 }
 0x647   : > { %v869_v32 = vadd.f32 1e-05, %v865_v30  ;;  %v860_v34 = vmul.f32 0.015625, %v856_v31 }
 0x648   : > { %v895_v59 = vpop.permute.xlu0 %894 }
 0x649   : > { %1071 = vrsqrt.f32 %v869_v32  ;;  %v864_v35 = vsub.f32 %v860_v34, %v862_v33 }
 0x64a   : > { %v890_v51 = vpop.permute.xlu1 %889 }
 0x64b   : > { %v866_v36 = vmax.f32 %v864_v35, 0.0 }
 0x64c   : > { %v1068_v38 = vpop.eup %1067 }
 0x64d   : > { %v870_v37 = vadd.f32 1e-05, %v866_v36  ;;  %v762_v40 = vmul.f32 %v1068_v38, %v756_v39 }
 0x64f   : > { %1073 = vrsqrt.f32 %v870_v37  ;;  %v774_v0 = vmul.f32 %v767_v2, %v762_v40 }
 0x650   : > { %v1070_v41 = vpop.eup %1069 }
 0x651   : > { %v763_v47 = vmul.f32 %v1070_v41, %v757_v45  ;;  %v786_v53 = vadd.f32 %v779_v4, %v774_v0 }
 0x653   : > { %v775_v42 = vmul.f32 %v772_v63, %v763_v47 }
 0x655   : > { %v787_v60 = vadd.f32 %v784_v50, %v775_v42 }
 0x656   : > { %v1072_v44 = vpop.eup %1071 }
 0x657   : > { %v873_v46 = vmul.f32 %v1072_v44, %v867_v43 }
 0x659   : > { %v885_v48 = vmul.f32 %v878_v1, %v873_v46 }
 0x65b   : > { %v897_v54 = vadd.f32 %v890_v51, %v885_v48 }
 0x65c   : > { %v1074_v56 = vpop.eup %1073 }
 0x65d   : > { %v874_v57 = vmul.f32 %v1074_v56, %v868_v52  ;;  %v899_v58 = vadd.f32 %v897_v54, %v786_v53 }
 0x65f   : > { %v886_v3 = vmul.f32 %v883_v5, %v874_v57  ;;  %v901_v49 = vmax.f32 %v899_v58, 0.0 }
 0x661   : > { %v898_v61 = vadd.f32 %v895_v59, %v886_v3  ;;  %903 = vst.msk [vmem:[%s437_s29] sm:$0xff] %vm492_vm3, %v901_v49 }
 0x663   : > { %v900_v62 = vadd.f32 %v898_v61, %v787_v60 }
 0x665   : > { %v902_v1 = vmax.f32 %v900_v62, 0.0 }
 0x667   : > { %904 = vst.msk [vmem:[%s437_s29 + $0x8] sm:$0xff] %vm492_vm3, %v902_v1 }
 0x668 PF: > { %s23_s25 = sadd.s32 1, %s1081_s25  }
 0x669   : > { %p20_p4 = scmp.ge.s32.totalorder %s23_s25, 4  }
 0x66b   :  { %22 = sbr.rel (!%p20_p4) target bundleno = 1 (0x1), region = 102 }

</bundles_post_ra>
